<compile_context>
chip_gen: v5e
topology: v5e:2x2
jax: 0.10.0
libtpu: 0.0.40
codegen_flags: <defaults>
</compile_context>

<pallas_src>
import functools

import jax
import jax.numpy as jnp
from jax.experimental import pallas as pl
from jax.experimental.pallas import tpu as pltpu


_HIDDEN = 256


def _round_up(x, m):
    return ((x + m - 1) // m) * m


def _vmem_capacity_bytes():
    """Physical per-core VMEM bytes; falls back to the v5e/v6e value."""
    try:
        info = pltpu.get_tpu_info()
        cap = getattr(info, "vmem_capacity_bytes", None)
        if cap:
            return int(cap)
    except Exception:
        pass
    return 128 * 1024 * 1024


def _choose_block_b(batch, per_row_bytes, resident_bytes, vmem_budget, align):
    """Rows per grid step: VMEM-fitting, sublane/pack aligned, and (for large
    batches) a multiple of 128 with >= 2 grid steps for v7x megacore."""
    fit = (vmem_budget - resident_bytes) // max(per_row_bytes, 1)
    fit = max(align, (int(fit) // align) * align)
    if batch <= 128:
        return min(_round_up(batch, align), fit)
    blk = _round_up(pl.cdiv(batch, 2), 128)          # >= 2 steps, full MXU M-dim
    cap = 1024 if vmem_budget <= 72 * 1024 * 1024 else 2048   # v7x vs v5e/v6e
    return max(align, min(blk, cap, fit))


def _mlp_kernel(x_ref, w1_ref, b1_ref, w2_ref, b2_ref, w3_ref, b3_ref,
                w4_ref, b4_ref, o_ref):
    # Entire hot path (4 matmuls + bias adds + ReLUs) stays on-chip in VMEM.
    # Operands are fed to the MXU in the weight dtype (bf16 by default); every
    # dot accumulates in f32 and the f32 biases are added to the accumulator.
    x = x_ref[...].astype(w1_ref.dtype)              # VPU down-cast, no HBM cost
    h = jnp.dot(x, w1_ref[...],
                preferred_element_type=jnp.float32) + b1_ref[...]
    h = jnp.maximum(h, 0.0)

    h = jnp.dot(h.astype(w2_ref.dtype), w2_ref[...],
                preferred_element_type=jnp.float32) + b2_ref[...]
    h = jnp.maximum(h, 0.0)

    h = jnp.dot(h.astype(w3_ref.dtype), w3_ref[...],
                preferred_element_type=jnp.float32) + b3_ref[...]
    h = jnp.maximum(h, 0.0)

    out = jnp.dot(h.astype(w4_ref.dtype), w4_ref[...],
                  preferred_element_type=jnp.float32) + b4_ref[...]
    o_ref[...] = out.astype(o_ref.dtype)


def _resident(shape):
    # Constant index_map: same block at every grid step -> DMA'd once and kept
    # VMEM-resident across the whole batch loop.
    return pl.BlockSpec(shape, lambda i: (0,) * len(shape))


@functools.partial(jax.jit,
                   static_argnames=("block_b", "compute_dtype", "out_dtype"))
def large_mlp_forward(x, params, block_b=None,
                      compute_dtype=jnp.bfloat16, out_dtype=None):
    """Fused LargeMLP forward.

    x:             [B, n_features] (f32 or bf16; not copied in the wrapper)
    params:        dict with w1..w4 ([in, out]) and b1..b4 ([1, out])
    compute_dtype: dtype fed to the MXU (default bf16; f32 accumulation).
                   Pass jnp.float32 for exact-f32 compute.
    out_dtype:     HBM output dtype (defaults to compute_dtype).
    """
    w1, b1 = params["w1"], params["b1"]
    w2, b2 = params["w2"], params["b2"]
    w3, b3 = params["w3"], params["b3"]
    w4, b4 = params["w4"], params["b4"]

    B, F = x.shape
    H = w1.shape[1]          # 256
    C = w4.shape[1]          # n_classes
    if out_dtype is None:
        out_dtype = compute_dtype

    # Weights are small (<= a few MiB): casting them here is cheap.  x stays in
    # its HBM dtype and is down-cast per tile inside the kernel.
    w1, w2, w3, w4 = (w.astype(compute_dtype) for w in (w1, w2, w3, w4))
    b1, b2, b3, b4 = (b.astype(jnp.float32) for b in (b1, b2, b3, b4))

    # ---- Lane-dense output: pad class dim (weights/bias only) to 128k. ----
    C_pad = _round_up(C, 128)
    if C_pad != C:
        w4 = jnp.pad(w4, ((0, 0), (0, C_pad - C)))
        b4 = jnp.pad(b4, ((0, 0), (0, C_pad - C)))

    # ---- VMEM-aware batch tiling (no wrapper-side padding of x). ----
    x_item = x.dtype.itemsize
    out_item = jnp.dtype(out_dtype).itemsize
    w_bytes = sum(a.size * a.dtype.itemsize
                  for a in (w1, b1, w2, b2, w3, b3, w4, b4))
    per_row = (2 * F * x_item            # x tile, double-buffered
               + 2 * C_pad * out_item    # out tile, double-buffered
               + 4 * H * 4)              # f32 intermediate-activation headroom
    vmem_budget = int(_vmem_capacity_bytes() * 0.85)   # compiler headroom
    align = 16 if jnp.dtype(compute_dtype) == jnp.dtype(jnp.bfloat16) else 8
    if block_b is None:
        block_b = _choose_block_b(B, per_row, 2 * w_bytes, vmem_budget, align)
    block_b = max(8, _round_up(block_b, 8))
    grid = (pl.cdiv(B, block_b),)   # ragged last tile; OOB rows masked on store

    per_step_bytes = block_b * per_row + 2 * w_bytes
    vmem_limit = int(min(vmem_budget,
                         max(2 * per_step_bytes, 32 * 1024 * 1024)))

    # ---- Scheduling hint for XLA. ----
    flops = 2 * B * (F * H + 2 * H * H + H * C_pad)
    cost = pl.CostEstimate(
        flops=flops, transcendentals=0,
        bytes_accessed=x.size * x_item + w_bytes + B * C_pad * out_item)

    out = pl.pallas_call(
        _mlp_kernel,
        out_shape=jax.ShapeDtypeStruct((B, C_pad), out_dtype),
        grid_spec=pltpu.PrefetchScalarGridSpec(
            num_scalar_prefetch=0,
            grid=grid,
            in_specs=[
                pl.BlockSpec((block_b, F), lambda i: (i, 0)),   # x batch tile
                _resident(w1.shape), _resident(b1.shape),
                _resident(w2.shape), _resident(b2.shape),
                _resident(w3.shape), _resident(b3.shape),
                _resident(w4.shape), _resident(b4.shape),
            ],
            out_specs=pl.BlockSpec((block_b, C_pad), lambda i: (i, 0)),
        ),
        compiler_params=pltpu.CompilerParams(
            dimension_semantics=("parallel",),
            vmem_limit_bytes=vmem_limit),
        cost_estimate=cost,
    )(x, w1, b1, w2, b2, w3, b3, w4, b4)

    return out[:, :C] if C_pad != C else out


def init_params(key, n_features, n_classes, hidden=_HIDDEN):
    """Deterministic synthetic init (PyTorch-Linear-like uniform fan-in bound)."""
    dims = [(n_features, hidden), (hidden, hidden), (hidden, hidden),
            (hidden, n_classes)]
    params = {}
    for idx, (d_in, d_out) in enumerate(dims, start=1):
        key, kw, kb = jax.random.split(key, 3)
        bound = 1.0 / jnp.sqrt(jnp.float32(d_in))
        params[f"w{idx}"] = jax.random.uniform(
            kw, (d_in, d_out), jnp.float32, -bound, bound)
        params[f"b{idx}"] = jax.random.uniform(
            kb, (1, d_out), jnp.float32, -bound, bound)
    return params


def _reference_forward(x, params):
    h = jax.nn.relu(x @ params["w1"] + params["b1"])
    h = jax.nn.relu(h @ params["w2"] + params["b2"])
    h = jax.nn.relu(h @ params["w3"] + params["b3"])
    return h @ params["w4"] + params["b4"]


if __name__ == "__main__":
    key = jax.random.PRNGKey(0)
    k_x, k_p = jax.random.split(key)

    batch = 8
    n_features = 32
    n_classes = 10

    x = jax.random.normal(k_x, (batch, n_features), jnp.float32)
    params = init_params(k_p, n_features, n_classes)

    y_ref = _reference_forward(x, params)

    # Exact-f32 path: tight check against the pure-JAX reference.
    y_f32 = jax.block_until_ready(
        large_mlp_forward(x, params, compute_dtype=jnp.float32))
    assert y_f32.shape == (batch, n_classes)
    assert jnp.allclose(y_f32, y_ref, atol=1e-4, rtol=1e-4), "f32 mismatch"

    # Default path: bf16 MXU operands, f32 accumulation, bf16 output.
    y_bf16 = jax.block_until_ready(large_mlp_forward(x, params))
    assert y_bf16.shape == (batch, n_classes)
    assert jnp.allclose(y_bf16.astype(jnp.float32), y_ref,
                        atol=1e-1, rtol=1e-1), "bf16 mismatch"

    print("KERNEL_OK")
</pallas_src>

<mosaic_0001>
module attributes {stable_mosaic.version = 11 : i64} {
  func.func @_mlp_kernel(%arg0: i32, %arg1: memref<8x32xf32, #tpu.memory_space<vmem>>, %arg2: memref<32x256xf32, #tpu.memory_space<vmem>>, %arg3: memref<1x256xf32, #tpu.memory_space<vmem>>, %arg4: memref<256x256xf32, #tpu.memory_space<vmem>>, %arg5: memref<1x256xf32, #tpu.memory_space<vmem>>, %arg6: memref<256x256xf32, #tpu.memory_space<vmem>>, %arg7: memref<1x256xf32, #tpu.memory_space<vmem>>, %arg8: memref<256x128xf32, #tpu.memory_space<vmem>>, %arg9: memref<1x128xf32, #tpu.memory_space<vmem>>, %arg10: memref<8x128xf32, #tpu.memory_space<vmem>>) attributes {dimension_semantics = [#tpu.dimension_semantics<parallel>], iteration_bounds = array<i64: 1>, scalar_prefetch = 0 : i64, scratch_operands = 0 : i64, tpu.core_type = #tpu.core_type<tc>, window_params = [{transform_indices = @transform_0, window_bounds = array<i64: 8, 32>}, {pipeline_mode = #tpu.pipeline_mode<synchronous>, transform_indices = @transform_1, window_bounds = array<i64: 32, 256>}, {pipeline_mode = #tpu.pipeline_mode<synchronous>, transform_indices = @transform_2, window_bounds = array<i64: 1, 256>}, {pipeline_mode = #tpu.pipeline_mode<synchronous>, transform_indices = @transform_3, window_bounds = array<i64: 256, 256>}, {pipeline_mode = #tpu.pipeline_mode<synchronous>, transform_indices = @transform_4, window_bounds = array<i64: 1, 256>}, {pipeline_mode = #tpu.pipeline_mode<synchronous>, transform_indices = @transform_5, window_bounds = array<i64: 256, 256>}, {pipeline_mode = #tpu.pipeline_mode<synchronous>, transform_indices = @transform_6, window_bounds = array<i64: 1, 256>}, {pipeline_mode = #tpu.pipeline_mode<synchronous>, transform_indices = @transform_7, window_bounds = array<i64: 256, 128>}, {pipeline_mode = #tpu.pipeline_mode<synchronous>, transform_indices = @transform_8, window_bounds = array<i64: 1, 128>}, {transform_indices = @transform_9, window_bounds = array<i64: 8, 128>}]} {
    %c0 = arith.constant 0 : index
    %c0_0 = arith.constant 0 : index
    %0 = vector.load %arg1[%c0, %c0_0] : memref<8x32xf32, #tpu.memory_space<vmem>>, vector<8x32xf32>
    %c0_1 = arith.constant 0 : index
    %c0_2 = arith.constant 0 : index
    %1 = vector.load %arg2[%c0_1, %c0_2] : memref<32x256xf32, #tpu.memory_space<vmem>>, vector<32x256xf32>
    %cst = arith.constant dense<0.000000e+00> : vector<8x256xf32>
    %2 = tpu.matmul %0, %1, %cst {dimension_numbers = #tpu.dot_dimension_numbers<[1], [0], [0], [1], [0, 0, 1, 1], [], []>} : vector<8x32xf32>, vector<32x256xf32>, vector<8x256xf32> -> vector<8x256xf32>
    %c0_3 = arith.constant 0 : index
    %c0_4 = arith.constant 0 : index
    %3 = vector.load %arg3[%c0_3, %c0_4] : memref<1x256xf32, #tpu.memory_space<vmem>>, vector<1x256xf32>
    %4 = vector.broadcast %3 : vector<1x256xf32> to vector<8x256xf32>
    %5 = arith.addf %2, %4 : vector<8x256xf32>
    %cst_5 = arith.constant 0.000000e+00 : f32
    %6 = vector.broadcast %cst_5 : f32 to vector<8x256xf32>
    %7 = arith.maximumf %5, %6 : vector<8x256xf32>
    %c0_6 = arith.constant 0 : index
    %c0_7 = arith.constant 0 : index
    %8 = vector.load %arg4[%c0_6, %c0_7] : memref<256x256xf32, #tpu.memory_space<vmem>>, vector<256x256xf32>
    %cst_8 = arith.constant dense<0.000000e+00> : vector<8x256xf32>
    %9 = tpu.matmul %7, %8, %cst_8 {dimension_numbers = #tpu.dot_dimension_numbers<[1], [0], [0], [1], [0, 0, 1, 1], [], []>} : vector<8x256xf32>, vector<256x256xf32>, vector<8x256xf32> -> vector<8x256xf32>
    %c0_9 = arith.constant 0 : index
    %c0_10 = arith.constant 0 : index
    %10 = vector.load %arg5[%c0_9, %c0_10] : memref<1x256xf32, #tpu.memory_space<vmem>>, vector<1x256xf32>
    %11 = vector.broadcast %10 : vector<1x256xf32> to vector<8x256xf32>
    %12 = arith.addf %9, %11 : vector<8x256xf32>
    %cst_11 = arith.constant 0.000000e+00 : f32
    %13 = vector.broadcast %cst_11 : f32 to vector<8x256xf32>
    %14 = arith.maximumf %12, %13 : vector<8x256xf32>
    %c0_12 = arith.constant 0 : index
    %c0_13 = arith.constant 0 : index
    %15 = vector.load %arg6[%c0_12, %c0_13] : memref<256x256xf32, #tpu.memory_space<vmem>>, vector<256x256xf32>
    %cst_14 = arith.constant dense<0.000000e+00> : vector<8x256xf32>
    %16 = tpu.matmul %14, %15, %cst_14 {dimension_numbers = #tpu.dot_dimension_numbers<[1], [0], [0], [1], [0, 0, 1, 1], [], []>} : vector<8x256xf32>, vector<256x256xf32>, vector<8x256xf32> -> vector<8x256xf32>
    %c0_15 = arith.constant 0 : index
    %c0_16 = arith.constant 0 : index
    %17 = vector.load %arg7[%c0_15, %c0_16] : memref<1x256xf32, #tpu.memory_space<vmem>>, vector<1x256xf32>
    %18 = vector.broadcast %17 : vector<1x256xf32> to vector<8x256xf32>
    %19 = arith.addf %16, %18 : vector<8x256xf32>
    %cst_17 = arith.constant 0.000000e+00 : f32
    %20 = vector.broadcast %cst_17 : f32 to vector<8x256xf32>
    %21 = arith.maximumf %19, %20 : vector<8x256xf32>
    %c0_18 = arith.constant 0 : index
    %c0_19 = arith.constant 0 : index
    %22 = vector.load %arg8[%c0_18, %c0_19] : memref<256x128xf32, #tpu.memory_space<vmem>>, vector<256x128xf32>
    %cst_20 = arith.constant dense<0.000000e+00> : vector<8x128xf32>
    %23 = tpu.matmul %21, %22, %cst_20 {dimension_numbers = #tpu.dot_dimension_numbers<[1], [0], [0], [1], [0, 0, 1, 1], [], []>} : vector<8x256xf32>, vector<256x128xf32>, vector<8x128xf32> -> vector<8x128xf32>
    %c0_21 = arith.constant 0 : index
    %c0_22 = arith.constant 0 : index
    %24 = vector.load %arg9[%c0_21, %c0_22] : memref<1x128xf32, #tpu.memory_space<vmem>>, vector<1x128xf32>
    %25 = vector.broadcast %24 : vector<1x128xf32> to vector<8x128xf32>
    %26 = arith.addf %23, %25 : vector<8x128xf32>
    %c0_23 = arith.constant 0 : index
    %c0_24 = arith.constant 0 : index
    %27 = vector.load %arg10[%c0_23, %c0_24] : memref<8x128xf32, #tpu.memory_space<vmem>>, vector<8x128xf32>
    tpu.vector_store %arg10[%c0_23, %c0_24], %26 {strides = array<i32>} : memref<8x128xf32, #tpu.memory_space<vmem>>, vector<8x128xf32>,
    return
  }
  func.func @transform_0(%arg0: i32) -> (i32, i32) {
    %c0_i32 = arith.constant 0 : i32
    %c0_i32_0 = arith.constant 0 : i32
    return %arg0, %c0_i32 : i32, i32
  }
  func.func @transform_1(%arg0: i32) -> (i32, i32) {
    %c0_i32 = arith.constant 0 : i32
    %c0_i32_0 = arith.constant 0 : i32
    %c0_i32_1 = arith.constant 0 : i32
    return %c0_i32, %c0_i32_0 : i32, i32
  }
  func.func @transform_2(%arg0: i32) -> (i32, i32) {
    %c0_i32 = arith.constant 0 : i32
    %c0_i32_0 = arith.constant 0 : i32
    %c0_i32_1 = arith.constant 0 : i32
    return %c0_i32, %c0_i32_0 : i32, i32
  }
  func.func @transform_3(%arg0: i32) -> (i32, i32) {
    %c0_i32 = arith.constant 0 : i32
    %c0_i32_0 = arith.constant 0 : i32
    %c0_i32_1 = arith.constant 0 : i32
    return %c0_i32, %c0_i32_0 : i32, i32
  }
  func.func @transform_4(%arg0: i32) -> (i32, i32) {
    %c0_i32 = arith.constant 0 : i32
    %c0_i32_0 = arith.constant 0 : i32
    %c0_i32_1 = arith.constant 0 : i32
    return %c0_i32, %c0_i32_0 : i32, i32
  }
  func.func @transform_5(%arg0: i32) -> (i32, i32) {
    %c0_i32 = arith.constant 0 : i32
    %c0_i32_0 = arith.constant 0 : i32
    %c0_i32_1 = arith.constant 0 : i32
    return %c0_i32, %c0_i32_0 : i32, i32
  }
  func.func @transform_6(%arg0: i32) -> (i32, i32) {
    %c0_i32 = arith.constant 0 : i32
    %c0_i32_0 = arith.constant 0 : i32
    %c0_i32_1 = arith.constant 0 : i32
    return %c0_i32, %c0_i32_0 : i32, i32
  }
  func.func @transform_7(%arg0: i32) -> (i32, i32) {
    %c0_i32 = arith.constant 0 : i32
    %c0_i32_0 = arith.constant 0 : i32
    %c0_i32_1 = arith.constant 0 : i32
    return %c0_i32, %c0_i32_0 : i32, i32
  }
  func.func @transform_8(%arg0: i32) -> (i32, i32) {
    %c0_i32 = arith.constant 0 : i32
    %c0_i32_0 = arith.constant 0 : i32
    %c0_i32_1 = arith.constant 0 : i32
    return %c0_i32, %c0_i32_0 : i32, i32
  }
  func.func @transform_9(%arg0: i32) -> (i32, i32) {
    %c0_i32 = arith.constant 0 : i32
    %c0_i32_0 = arith.constant 0 : i32
    return %arg0, %c0_i32 : i32, i32
  }
}

</mosaic_0001>

<bundles_post_ra>
// kernel: large_mlp_forward.1
= control target key start
LH: loop header
LB: loop body
LE: loop exit
PB: predicated region body
PF: predicated region fallthrough
CT: control target
= control target key end

     0   :  { %14 = vsyncpa [#allocation3], 0  ;;  %s954_s0 = inlined_call_operand.vmem [shape: f32[8,32], index: 0, kind: input, shape index: {}]   ;;  %s955_s1 = inlined_call_operand.vmem [shape: f32[32,256], index: 1, kind: input, shape index: {}]   ;;  %s956_s2 = inlined_call_operand.vmem [shape: f32[1,256], index: 2, kind: input, shape index: {}]   ;;  %s957_s3 = inlined_call_operand.vmem [shape: f32[256,256], index: 3, kind: input, shape index: {}]   ;;  %s958_s4 = inlined_call_operand.vmem [shape: f32[1,256], index: 4, kind: input, shape index: {}]   ;;  %s959_s5 = inlined_call_operand.hbm [shape: f32[256,256], index: 5, kind: input, shape index: {}]   ;;  %s960_s6 = inlined_call_operand.vmem [shape: f32[1,256], index: 6, kind: input, shape index: {}]   ;;  %s961_s7 = inlined_call_operand.vmem [shape: f32[256,128], index: 7, kind: input, shape index: {}]   ;;  %s962_s8 = inlined_call_operand.vmem [shape: f32[1,128], index: 8, kind: input, shape index: {}]   ;;  %s963_s9 = inlined_call_operand.hbm [shape: f32[8,128], index: 9, kind: output, shape index: {}]  }
   0x1   :  { %15 = vsyncpa [#allocation4], 0  ;;  %s30_s11 = sshll.u32 %s959_s5, 4  ;;  %s567_s12 = smov [#allocation2]   ;;  %s31_s11 = int_to_ptr.hbm [resolvable:$true] %s30_s11 }
   0x2   :  { %s32_s13 = sshll.u32 %s567_s12, 4  ;;  %s568_s14 = smov 256   ;;  %s33_s13 = int_to_ptr.vmem [resolvable:$true] %s32_s13 }
   0x3   :  { %s569_s15 = smov 16  }
   0x4   :  { %38 = dma.hbm_to_vmem [thread:$0]  %s31_s11, 8192, %s33_s13, [#allocation3], %s568_s14, %s568_s14, %s569_s15  }
   0x5   :  { %563 = dma.done.wait [#allocation3], 8192  }
   0x6   :  { %564 = vsyncadd [#allocation3], 4294959104  ;;  %v56_v0 = vld [vmem:[%s955_s1 + $0x30] sm:$0xff]  ;;  %v54_v1 = vld [vmem:[%s955_s1 + $0x20] sm:$0xff]  ;;  %vm64_vm0 = vcmask 261120   ;;  %s498_s14 = sshll.u32 %s963_s9, 4  ;;  %s499_s14 = int_to_ptr.hbm [resolvable:$true] %s498_s14 }
   0x7   :  { %v57_v2 = vld [vmem:[%s955_s1 + $0x38] sm:$0xff]  ;;  %80 = vmatpush.msra.mxu0 %v56_v0  ;;  %v55_v3 = vld [vmem:[%s955_s1 + $0x28] sm:$0xff]  ;;  %v52_v4 = vld [vmem:[%s955_s1 + $0x10] sm:$0xff] }
   0x8   :  { %100 = vmatpush.msra.mxu1 %v57_v2  ;;  %v53_v5 = vld [vmem:[%s955_s1 + $0x18] sm:$0xff]  ;;  %v140_v6 = vld [vmem:[%s957_s3 + $0xf0] sm:$0xff]  ;;  %v138_v7 = vld [vmem:[%s957_s3 + $0xe0] sm:$0xff] }
   0x9   :  { %81 = vmatpush.msra.mxu0 %v54_v1  ;;  %v50_v8 = vld [vmem:[%s955_s1] sm:$0xff]  ;;  %v51_v9 = vld [vmem:[%s955_s1 + $0x8] sm:$0xff]  ;;  %180 = vmatpush.msra.mxu2 %v140_v6  ;;  %v172_v10 = vld [vmem:[%s957_s3 + $0x1f0] sm:$0xff] }
   0xa   :  { %101 = vmatpush.msra.mxu1 %v55_v3  ;;  %v49_v11 = vld [vmem:[%s954_s0] sm:$0xff]  ;;  %v141_v12 = vld [vmem:[%s957_s3 + $0xf8] sm:$0xff]  ;;  %200 = vmatpush.msra.mxu3 %v172_v10  ;;  %v136_v14 = vld [vmem:[%s957_s3 + $0xd0] sm:$0xff] }
   0xb   :  { %82 = vmatpush.msra.mxu0 %v52_v4  ;;  %181 = vmatpush.msra.mxu2 %v138_v7  ;;  %v173_v13 = vld [vmem:[%s957_s3 + $0x1f8] sm:$0xff]  ;;  %v170_v15 = vld [vmem:[%s957_s3 + $0x1e0] sm:$0xff]  ;;  %v139_v16 = vld [vmem:[%s957_s3 + $0xe8] sm:$0xff] }
   0xc   :  { %102 = vmatpush.msra.mxu1 %v53_v5  ;;  %v171_v17 = vld [vmem:[%s957_s3 + $0x1e8] sm:$0xff]  ;;  %v134_v18 = vld [vmem:[%s957_s3 + $0xc0] sm:$0xff]  ;;  %v168_v19 = vld [vmem:[%s957_s3 + $0x1d0] sm:$0xff]  ;;  %201 = vmatpush.msra.mxu3 %v170_v15 }
   0xd   :  { %83 = vmatpush.msra.mxu0 %v50_v8  ;;  %182 = vmatpush.msra.mxu2 %v136_v14  ;;  %v137_v20 = vld [vmem:[%s957_s3 + $0xd8] sm:$0xff]  ;;  %v132_v22 = vld [vmem:[%s957_s3 + $0xb0] sm:$0xff]  ;;  %v166_v23 = vld [vmem:[%s957_s3 + $0x1c0] sm:$0xff] }
   0xe   :  { %103 = vmatpush.msra.mxu1 %v51_v9  ;;  %508 = vmatmul.msk.f32.vlgmr.msra.gmra.mxu0 %vm64_vm0, %v49_v11  ;;  %v169_v21 = vld [vmem:[%s957_s3 + $0x1d8] sm:$0xff]  ;;  %v135_v24 = vld [vmem:[%s957_s3 + $0xc8] sm:$0xff]  ;;  %v130_v26 = vld [vmem:[%s957_s3 + $0xa0] sm:$0xff] }
   0xf   :  { %509 = vmatmul.msk.f32.vlgmr.msra.gmra.mxu1 %vm64_vm0, %v49_v11  ;;  %220 = vmatpush.msrb.mxu0 %v141_v12  ;;  %v167_v25 = vld [vmem:[%s957_s3 + $0x1c8] sm:$0xff]  ;;  %v164_v27 = vld [vmem:[%s957_s3 + $0x1b0] sm:$0xff]  ;;  %v133_v28 = vld [vmem:[%s957_s3 + $0xb8] sm:$0xff] }
  0x10   :  { %240 = vmatpush.msrb.mxu1 %v173_v13  ;;  %183 = vmatpush.msra.mxu2 %v134_v18  ;;  %v165_v29 = vld [vmem:[%s957_s3 + $0x1b8] sm:$0xff]  ;;  %v128_v30 = vld [vmem:[%s957_s3 + $0x90] sm:$0xff]  ;;  %v162_v31 = vld [vmem:[%s957_s3 + $0x1a0] sm:$0xff] }
  0x11   :  { %221 = vmatpush.msrb.mxu0 %v139_v16  ;;  %202 = vmatpush.msra.mxu3 %v168_v19  ;;  %v131_v32 = vld [vmem:[%s957_s3 + $0xa8] sm:$0xff]  ;;  %v126_v34 = vld [vmem:[%s957_s3 + $0x80] sm:$0xff]  ;;  %v160_v35 = vld [vmem:[%s957_s3 + $0x190] sm:$0xff] }
  0x12   :  { %241 = vmatpush.msrb.mxu1 %v171_v17  ;;  %184 = vmatpush.msra.mxu2 %v132_v22  ;;  %v163_v33 = vld [vmem:[%s957_s3 + $0x1a8] sm:$0xff]  ;;  %v129_v36 = vld [vmem:[%s957_s3 + $0x98] sm:$0xff]  ;;  %v124_v38 = vld [vmem:[%s957_s3 + $0x70] sm:$0xff] }
  0x13   :  { %222 = vmatpush.msrb.mxu0 %v137_v20  ;;  %203 = vmatpush.msra.mxu3 %v166_v23  ;;  %v161_v37 = vld [vmem:[%s957_s3 + $0x198] sm:$0xff]  ;;  %v158_v39 = vld [vmem:[%s957_s3 + $0x180] sm:$0xff]  ;;  %v127_v40 = vld [vmem:[%s957_s3 + $0x88] sm:$0xff] }
  0x14   :  { %242 = vmatpush.msrb.mxu1 %v169_v21  ;;  %185 = vmatpush.msra.mxu2 %v130_v26  ;;  %v159_v41 = vld [vmem:[%s957_s3 + $0x188] sm:$0xff]  ;;  %v122_v42 = vld [vmem:[%s957_s3 + $0x60] sm:$0xff]  ;;  %v156_v43 = vld [vmem:[%s957_s3 + $0x170] sm:$0xff] }
  0x15   :  { %223 = vmatpush.msrb.mxu0 %v135_v24  ;;  %204 = vmatpush.msra.mxu3 %v164_v27  ;;  %v125_v44 = vld [vmem:[%s957_s3 + $0x78] sm:$0xff]  ;;  %v120_v46 = vld [vmem:[%s957_s3 + $0x50] sm:$0xff]  ;;  %v154_v47 = vld [vmem:[%s957_s3 + $0x160] sm:$0xff] }
  0x16   :  { %243 = vmatpush.msrb.mxu1 %v167_v25  ;;  %186 = vmatpush.msra.mxu2 %v128_v30  ;;  %v157_v45 = vld [vmem:[%s957_s3 + $0x178] sm:$0xff]  ;;  %v123_v48 = vld [vmem:[%s957_s3 + $0x68] sm:$0xff]  ;;  %v118_v50 = vld [vmem:[%s957_s3 + $0x40] sm:$0xff] }
  0x17   :  { %224 = vmatpush.msrb.mxu0 %v133_v28  ;;  %205 = vmatpush.msra.mxu3 %v162_v31  ;;  %v155_v49 = vld [vmem:[%s957_s3 + $0x168] sm:$0xff]  ;;  %v152_v51 = vld [vmem:[%s957_s3 + $0x150] sm:$0xff]  ;;  %v121_v52 = vld [vmem:[%s957_s3 + $0x58] sm:$0xff] }
  0x18   :  { %244 = vmatpush.msrb.mxu1 %v165_v29  ;;  %187 = vmatpush.msra.mxu2 %v126_v34  ;;  %v153_v53 = vld [vmem:[%s957_s3 + $0x158] sm:$0xff]  ;;  %v116_v54 = vld [vmem:[%s957_s3 + $0x30] sm:$0xff]  ;;  %v150_v55 = vld [vmem:[%s957_s3 + $0x140] sm:$0xff] }
  0x19   :  { %225 = vmatpush.msrb.mxu0 %v131_v32  ;;  %206 = vmatpush.msra.mxu3 %v160_v35  ;;  %v119_v56 = vld [vmem:[%s957_s3 + $0x48] sm:$0xff]  ;;  %v117_v58 = vld [vmem:[%s957_s3 + $0x38] sm:$0xff]  ;;  %v114_v59 = vld [vmem:[%s957_s3 + $0x20] sm:$0xff] }
  0x1a   :  { %245 = vmatpush.msrb.mxu1 %v163_v33  ;;  %188 = vmatpush.msra.mxu2 %v124_v38  ;;  %v151_v57 = vld [vmem:[%s957_s3 + $0x148] sm:$0xff]  ;;  %v148_v60 = vld [vmem:[%s957_s3 + $0x130] sm:$0xff]  ;;  %v149_v62 = vld [vmem:[%s957_s3 + $0x138] sm:$0xff] }
  0x1b   :  { %226 = vmatpush.msrb.mxu0 %v129_v36  ;;  %207 = vmatpush.msra.mxu3 %v158_v39  ;;  %v115_v61 = vld [vmem:[%s957_s3 + $0x28] sm:$0xff]  ;;  %v112_v63 = vld [vmem:[%s957_s3 + $0x10] sm:$0xff]  ;;  %v146_v0 = vld [vmem:[%s957_s3 + $0x120] sm:$0xff] }
  0x1c   :  { %246 = vmatpush.msrb.mxu1 %v161_v37  ;;  %189 = vmatpush.msra.mxu2 %v122_v42  ;;  %v113_v1 = vld [vmem:[%s957_s3 + $0x18] sm:$0xff]  ;;  %v147_v2 = vld [vmem:[%s957_s3 + $0x128] sm:$0xff]  ;;  %v110_v3 = vld [vmem:[%s957_s3] sm:$0xff] }
  0x1d   :  { %227 = vmatpush.msrb.mxu0 %v127_v40  ;;  %208 = vmatpush.msra.mxu3 %v156_v43  ;;  %v144_v4 = vld [vmem:[%s957_s3 + $0x110] sm:$0xff]  ;;  %v111_v5 = vld [vmem:[%s957_s3 + $0x8] sm:$0xff]  ;;  %v145_v6 = vld [vmem:[%s957_s3 + $0x118] sm:$0xff] }
  0x1e   :  { %247 = vmatpush.msrb.mxu1 %v159_v41  ;;  %190 = vmatpush.msra.mxu2 %v120_v46  ;;  %v142_v7 = vld [vmem:[%s957_s3 + $0x100] sm:$0xff]  ;;  %v143_v8 = vld [vmem:[%s957_s3 + $0x108] sm:$0xff]  ;;  %v324_v9 = vld [vmem:[#allocation2 + $0x1f0] sm:$0xff] }
  0x1f   :  { %228 = vmatpush.msrb.mxu0 %v125_v44  ;;  %209 = vmatpush.msra.mxu3 %v154_v47  ;;  %v325_v10 = vld [vmem:[#allocation2 + $0x1f8] sm:$0xff]  ;;  %v322_v11 = vld [vmem:[#allocation2 + $0x1e0] sm:$0xff]  ;;  %v323_v12 = vld [vmem:[#allocation2 + $0x1e8] sm:$0xff] }
  0x20   :  { %248 = vmatpush.msrb.mxu1 %v157_v45  ;;  %191 = vmatpush.msra.mxu2 %v118_v50  ;;  %v320_v13 = vld [vmem:[#allocation2 + $0x1d0] sm:$0xff]  ;;  %v293_v15 = vld [vmem:[#allocation2 + $0xf8] sm:$0xff]  ;;  %v290_v17 = vld [vmem:[#allocation2 + $0xe0] sm:$0xff] }
  0x21   :  { %229 = vmatpush.msrb.mxu0 %v123_v48  ;;  %210 = vmatpush.msra.mxu3 %v152_v51  ;;  %v292_v14 = vld [vmem:[#allocation2 + $0xf0] sm:$0xff]  ;;  %v321_v16 = vld [vmem:[#allocation2 + $0x1d8] sm:$0xff]  ;;  %v318_v18 = vld [vmem:[#allocation2 + $0x1c0] sm:$0xff] }
  0x22   :  { %249 = vmatpush.msrb.mxu1 %v155_v49  ;;  %192 = vmatpush.msra.mxu2 %v116_v54  ;;  %v291_v19 = vld [vmem:[#allocation2 + $0xe8] sm:$0xff]  ;;  %v288_v20 = vld [vmem:[#allocation2 + $0xd0] sm:$0xff]  ;;  %v289_v22 = vld [vmem:[#allocation2 + $0xd8] sm:$0xff] }
  0x23   :  { %230 = vmatpush.msrb.mxu0 %v121_v52  ;;  %211 = vmatpush.msra.mxu3 %v150_v55  ;;  %v319_v21 = vld [vmem:[#allocation2 + $0x1c8] sm:$0xff]  ;;  %v316_v23 = vld [vmem:[#allocation2 + $0x1b0] sm:$0xff]  ;;  %v286_v24 = vld [vmem:[#allocation2 + $0xc0] sm:$0xff] }
  0x24   :  { %250 = vmatpush.msrb.mxu1 %v153_v53  ;;  %193 = vmatpush.msra.mxu2 %v114_v59  ;;  %v317_v25 = vld [vmem:[#allocation2 + $0x1b8] sm:$0xff]  ;;  %v287_v26 = vld [vmem:[#allocation2 + $0xc8] sm:$0xff]  ;;  %v314_v27 = vld [vmem:[#allocation2 + $0x1a0] sm:$0xff] }
  0x25   :  { %231 = vmatpush.msrb.mxu0 %v119_v56  ;;  %212 = vmatpush.msra.mxu3 %v148_v60  ;;  %v284_v28 = vld [vmem:[#allocation2 + $0xb0] sm:$0xff]  ;;  %v315_v29 = vld [vmem:[#allocation2 + $0x1a8] sm:$0xff]  ;;  %v285_v30 = vld [vmem:[#allocation2 + $0xb8] sm:$0xff] }
  0x26   :  { %251 = vmatpush.msrb.mxu1 %v151_v57  ;;  %194 = vmatpush.msra.mxu2 %v112_v63  ;;  %v312_v31 = vld [vmem:[#allocation2 + $0x190] sm:$0xff]  ;;  %v282_v32 = vld [vmem:[#allocation2 + $0xa0] sm:$0xff]  ;;  %v313_v33 = vld [vmem:[#allocation2 + $0x198] sm:$0xff] }
  0x27   :  { %232 = vmatpush.msrb.mxu0 %v117_v58  ;;  %213 = vmatpush.msra.mxu3 %v146_v0  ;;  %v283_v34 = vld [vmem:[#allocation2 + $0xa8] sm:$0xff]  ;;  %v310_v35 = vld [vmem:[#allocation2 + $0x180] sm:$0xff]  ;;  %v280_v36 = vld [vmem:[#allocation2 + $0x90] sm:$0xff] }
  0x28   :  { %252 = vmatpush.msrb.mxu1 %v149_v62  ;;  %195 = vmatpush.msra.mxu2 %v110_v3  ;;  %v311_v37 = vld [vmem:[#allocation2 + $0x188] sm:$0xff]  ;;  %v281_v38 = vld [vmem:[#allocation2 + $0x98] sm:$0xff]  ;;  %v308_v39 = vld [vmem:[#allocation2 + $0x170] sm:$0xff] }
  0x29   :  { %233 = vmatpush.msrb.mxu0 %v115_v61  ;;  %214 = vmatpush.msra.mxu3 %v144_v4  ;;  %v278_v40 = vld [vmem:[#allocation2 + $0x80] sm:$0xff]  ;;  %v309_v41 = vld [vmem:[#allocation2 + $0x178] sm:$0xff]  ;;  %v279_v42 = vld [vmem:[#allocation2 + $0x88] sm:$0xff] }
  0x2a   :  { %253 = vmatpush.msrb.mxu1 %v147_v2  ;;  %332 = vmatpush.msrb.mxu2 %v292_v14  ;;  %v306_v43 = vld [vmem:[#allocation2 + $0x160] sm:$0xff]  ;;  %v276_v44 = vld [vmem:[#allocation2 + $0x70] sm:$0xff]  ;;  %v307_v45 = vld [vmem:[#allocation2 + $0x168] sm:$0xff] }
  0x2b   :  { %234 = vmatpush.msrb.mxu0 %v113_v1  ;;  %215 = vmatpush.msra.mxu3 %v142_v7  ;;  %v277_v46 = vld [vmem:[#allocation2 + $0x78] sm:$0xff]  ;;  %v304_v47 = vld [vmem:[#allocation2 + $0x150] sm:$0xff]  ;;  %v58_v49 = vld [vmem:[%s956_s2] sm:$0x3] }
  0x2c   :  { %254 = vmatpush.msrb.mxu1 %v145_v6  ;;  %333 = vmatpush.msrb.mxu2 %v290_v17  ;;  %v305_v48 = vld [vmem:[#allocation2 + $0x158] sm:$0xff]  ;;  %v302_v50 = vld [vmem:[#allocation2 + $0x140] sm:$0xff]  ;;  %v303_v51 = vld [vmem:[#allocation2 + $0x148] sm:$0xff]  ;;  %v60_v52 = vperm.slane %v58_v49, 0  ;;  %v61_v53 = vperm.slane %v58_v49, 1 }
  0x2d   :  { %235 = vmatpush.msrb.mxu0 %v111_v5  ;;  %352 = vmatpush.msrb.mxu3 %v324_v9  ;;  %v274_v60 = vld [vmem:[#allocation2 + $0x60] sm:$0xff]  ;;  %v300_v61 = vld [vmem:[#allocation2 + $0x130] sm:$0xff]  ;;  %v275_v62 = vld [vmem:[#allocation2 + $0x68] sm:$0xff] }
  0x2e   :  { %255 = vmatpush.msrb.mxu1 %v143_v8  ;;  %334 = vmatpush.msrb.mxu2 %v288_v20  ;;  %v301_v63 = vld [vmem:[#allocation2 + $0x138] sm:$0xff]  ;;  %v272_v0 = vld [vmem:[#allocation2 + $0x50] sm:$0xff]  ;;  %v298_v1 = vld [vmem:[#allocation2 + $0x120] sm:$0xff] }
  0x2f   :  { %353 = vmatpush.msrb.mxu3 %v322_v11  ;;  %372 = vmatpush.msra.mxu0 %v293_v15  ;;  %v273_v2 = vld [vmem:[#allocation2 + $0x58] sm:$0xff]  ;;  %v299_v3 = vld [vmem:[#allocation2 + $0x128] sm:$0xff]  ;;  %v270_v4 = vld [vmem:[#allocation2 + $0x40] sm:$0xff] }
  0x30   :  { %392 = vmatpush.msra.mxu1 %v325_v10  ;;  %335 = vmatpush.msrb.mxu2 %v286_v24  ;;  %v296_v5 = vld [vmem:[#allocation2 + $0x110] sm:$0xff]  ;;  %v271_v6 = vld [vmem:[#allocation2 + $0x48] sm:$0xff]  ;;  %v297_v7 = vld [vmem:[#allocation2 + $0x118] sm:$0xff] }
  0x31   :  { %354 = vmatpush.msrb.mxu3 %v320_v13  ;;  %373 = vmatpush.msra.mxu0 %v291_v19  ;;  %v268_v8 = vld [vmem:[#allocation2 + $0x30] sm:$0xff]  ;;  %v294_v9 = vld [vmem:[#allocation2 + $0x100] sm:$0xff]  ;;  %v269_v10 = vld [vmem:[#allocation2 + $0x38] sm:$0xff] }
  0x32   :  { %393 = vmatpush.msra.mxu1 %v323_v12  ;;  %336 = vmatpush.msrb.mxu2 %v284_v28  ;;  %v295_v11 = vld [vmem:[#allocation2 + $0x108] sm:$0xff]  ;;  %v266_v12 = vld [vmem:[#allocation2 + $0x20] sm:$0xff]  ;;  %v264_v14 = vld [vmem:[#allocation2 + $0x10] sm:$0xff] }
  0x33   :  { %355 = vmatpush.msrb.mxu3 %v318_v18  ;;  %374 = vmatpush.msra.mxu0 %v289_v22  ;;  %v267_v13 = vld [vmem:[#allocation2 + $0x28] sm:$0xff]  ;;  %v265_v15 = vld [vmem:[#allocation2 + $0x18] sm:$0xff]  ;;  %v444_v19 = vld [vmem:[%s961_s7 + $0xf0] sm:$0xff] }
  0x34   :  { %394 = vmatpush.msra.mxu1 %v321_v16  ;;  %337 = vmatpush.msrb.mxu2 %v282_v32  ;;  %v262_v16 = vld [vmem:[#allocation2] sm:$0xff]  ;;  %v263_v17 = vld [vmem:[#allocation2 + $0x8] sm:$0xff]  ;;  %v445_v18 = vld [vmem:[%s961_s7 + $0xf8] sm:$0xff] }
  0x35   :  { %356 = vmatpush.msrb.mxu3 %v316_v23  ;;  %375 = vmatpush.msra.mxu0 %v287_v26  ;;  %v429_v20 = vld [vmem:[%s961_s7 + $0x78] sm:$0xff]  ;;  %v443_v22 = vld [vmem:[%s961_s7 + $0xe8] sm:$0xff]  ;;  %v442_v24 = vld [vmem:[%s961_s7 + $0xe0] sm:$0xff] }
  0x36   :  { %395 = vmatpush.msra.mxu1 %v319_v21  ;;  %338 = vmatpush.msrb.mxu2 %v280_v36  ;;  %v428_v21 = vld [vmem:[%s961_s7 + $0x70] sm:$0xff]  ;;  %v427_v23 = vld [vmem:[%s961_s7 + $0x68] sm:$0xff]  ;;  %v441_v26 = vld [vmem:[%s961_s7 + $0xd8] sm:$0xff] }
  0x37   :  { %357 = vmatpush.msrb.mxu3 %v314_v27  ;;  %376 = vmatpush.msra.mxu0 %v285_v30  ;;  %v425_v27 = vld [vmem:[%s961_s7 + $0x58] sm:$0xff]  ;;  %v440_v28 = vld [vmem:[%s961_s7 + $0xd0] sm:$0xff]  ;;  %v439_v30 = vld [vmem:[%s961_s7 + $0xc8] sm:$0xff] }
  0x38   :  { %396 = vmatpush.msra.mxu1 %v317_v25  ;;  %339 = vmatpush.msrb.mxu2 %v278_v40  ;;  %v426_v25 = vld [vmem:[%s961_s7 + $0x60] sm:$0xff]  ;;  %v435_v49 = vld [vmem:[%s961_s7 + $0xa8] sm:$0xff] }
  0x39   :  { %358 = vmatpush.msrb.mxu3 %v312_v31  ;;  %377 = vmatpush.msra.mxu0 %v283_v34  ;;  %v438_v31 = vld [vmem:[%s961_s7 + $0xc0] sm:$0xff] }
  0x3a   :  { %397 = vmatpush.msra.mxu1 %v315_v29  ;;  %340 = vmatpush.msrb.mxu2 %v276_v44  ;;  %v424_v29 = vld [vmem:[%s961_s7 + $0x50] sm:$0xff]  ;;  %v174_v32 = vld [vmem:[%s958_s4] sm:$0x3] }
  0x3b   :  { %359 = vmatpush.msrb.mxu3 %v310_v35  ;;  %378 = vmatpush.msra.mxu0 %v281_v38  ;;  %v177_v34 = vperm.slane %v174_v32, 1 }
  0x3c   :  { %398 = vmatpush.msra.mxu1 %v313_v33  ;;  %341 = vmatpush.msrb.mxu2 %v274_v60  ;;  %v437_v33 = vld [vmem:[%s961_s7 + $0xb8] sm:$0xff]  ;;  %v416_v60 = vld [vmem:[%s961_s7 + $0x10] sm:$0xff] }
  0x3d   :  { %360 = vmatpush.msrb.mxu3 %v308_v39  ;;  %379 = vmatpush.msra.mxu0 %v279_v42  ;;  %v176_v39 = vperm.slane %v174_v32, 0 }
  0x3e   :  { %399 = vmatpush.msra.mxu1 %v311_v37  ;;  %342 = vmatpush.msrb.mxu2 %v272_v0 }
  0x3f   :  { %361 = vmatpush.msrb.mxu3 %v306_v43  ;;  %380 = vmatpush.msra.mxu0 %v277_v46  ;;  %v423_v46 = vld [vmem:[%s961_s7 + $0x48] sm:$0xff] }
  0x40   :  { %400 = vmatpush.msra.mxu1 %v309_v41  ;;  %343 = vmatpush.msrb.mxu2 %v270_v4 }
  0x41   :  { %362 = vmatpush.msrb.mxu3 %v304_v47  ;;  %381 = vmatpush.msra.mxu0 %v275_v62  ;;  %v436_v47 = vld [vmem:[%s961_s7 + $0xb0] sm:$0xff]  ;;  %v414_v62 = vld [vmem:[%s961_s7] sm:$0xff] }
  0x42   :  { %401 = vmatpush.msra.mxu1 %v307_v45  ;;  %344 = vmatpush.msrb.mxu2 %v268_v8 }
  0x43   :  { %363 = vmatpush.msrb.mxu3 %v302_v50  ;;  %382 = vmatpush.msra.mxu0 %v273_v2  ;;  %v421_v50 = vld [vmem:[%s961_s7 + $0x38] sm:$0xff] }
  0x44   :  { %402 = vmatpush.msra.mxu1 %v305_v48  ;;  %345 = vmatpush.msrb.mxu2 %v266_v12  ;;  %v422_v48 = vld [vmem:[%s961_s7 + $0x40] sm:$0xff] }
  0x45   :  { %364 = vmatpush.msrb.mxu3 %v300_v61  ;;  %383 = vmatpush.msra.mxu0 %v271_v6  ;;  %v415_v61 = vld [vmem:[%s961_s7 + $0x8] sm:$0xff]  ;;  %v514_v12 = vld [vmem:[%s962_s8] ss:$0 sm:$0xff] }
  0x46   :  { %403 = vmatpush.msra.mxu1 %v303_v51  ;;  %346 = vmatpush.msrb.mxu2 %v264_v14  ;;  %v434_v51 = vld [vmem:[%s961_s7 + $0xa0] sm:$0xff] }
  0x47   :  { %365 = vmatpush.msrb.mxu3 %v298_v1  ;;  %384 = vmatpush.msra.mxu0 %v269_v10 }
  0x48   :  { %404 = vmatpush.msra.mxu1 %v301_v63  ;;  %347 = vmatpush.msrb.mxu2 %v262_v16  ;;  %v326_v63 = vld [vmem:[%s960_s6] sm:$0x3]  ;;  %s570_s6 = smov [#allocation5]  }
  0x49   :  { %366 = vmatpush.msrb.mxu3 %v296_v5  ;;  %385 = vmatpush.msra.mxu0 %v267_v13  ;;  %v329_v0 = vperm.slane %v326_v63, 1  ;;  %v328_v5 = vperm.slane %v326_v63, 0  ;;  %s496_s11 = sshll.u32 %s570_s6, 4  ;;  %s497_s11 = int_to_ptr.vmem [resolvable:$true] %s496_s11 }
  0x4a   :  { %405 = vmatpush.msra.mxu1 %v299_v3 }
  0x4b   :  { %367 = vmatpush.msrb.mxu3 %v294_v9  ;;  %386 = vmatpush.msra.mxu0 %v265_v15 }
  0x4c   :  { %406 = vmatpush.msra.mxu1 %v297_v7 }
  0x4d   :  { %387 = vmatpush.msra.mxu0 %v263_v17 }
  0x4e   :  { %407 = vmatpush.msra.mxu1 %v295_v11 }
  0x8b   :  { %v85_v54 = vpop.f32.mrf.mxu0 }
  0x8c   :  { %v105_v55 = vpop.f32.mrf.mxu1  ;;  %v86_v56 = vadd.f32 %v85_v54, %v60_v52  ;;  %v420_v52 = vld [vmem:[%s961_s7 + $0x30] sm:$0xff]  ;;  %v419_v54 = vld [vmem:[%s961_s7 + $0x28] sm:$0xff] }
  0x8d   :  { %v106_v57 = vadd.f32 %v105_v55, %v61_v53  ;;  %v433_v53 = vld [vmem:[%s961_s7 + $0x98] sm:$0xff]  ;;  %v432_v55 = vld [vmem:[%s961_s7 + $0x90] sm:$0xff] }
  0x8e   :  { %v108_v58 = vmax.f32 %v86_v56, 0.0  ;;  %v418_v56 = vld [vmem:[%s961_s7 + $0x20] sm:$0xff] }
  0x8f   :  { %v109_v59 = vmax.f32 %v106_v57, 0.0  ;;  %v431_v57 = vld [vmem:[%s961_s7 + $0x88] sm:$0xff] }
  0x90   :  { %196 = vmatmul.f32.vlgmr.msra.gmra.mxu2 %v108_v58  ;;  %236 = vmatmul.f32.vlgmr.msrb.gmra.mxu0 %v108_v58  ;;  %v417_v58 = vld [vmem:[%s961_s7 + $0x18] sm:$0xff] }
  0x91   :  { %216 = vmatmul.f32.vlgmr.msra.gmra.mxu3 %v109_v59  ;;  %256 = vmatmul.f32.vlgmr.msrb.gmra.mxu1 %v109_v59  ;;  %v430_v59 = vld [vmem:[%s961_s7 + $0x80] sm:$0xff] }
  0x92   :  { %470 = vmatpush.msra.mxu3 %v445_v18  ;;  %450 = vmatpush.msra.mxu2 %v429_v20 }
  0x94   :  { %471 = vmatpush.msra.mxu3 %v444_v19  ;;  %451 = vmatpush.msra.mxu2 %v428_v21 }
  0x96   :  { %472 = vmatpush.msra.mxu3 %v443_v22  ;;  %452 = vmatpush.msra.mxu2 %v427_v23 }
  0x98   :  { %473 = vmatpush.msra.mxu3 %v442_v24  ;;  %453 = vmatpush.msra.mxu2 %v426_v25 }
  0x9a   :  { %474 = vmatpush.msra.mxu3 %v441_v26  ;;  %454 = vmatpush.msra.mxu2 %v425_v27 }
  0x9c   :  { %475 = vmatpush.msra.mxu3 %v440_v28  ;;  %455 = vmatpush.msra.mxu2 %v424_v29 }
  0x9e   :  { %476 = vmatpush.msra.mxu3 %v439_v30  ;;  %456 = vmatpush.msra.mxu2 %v423_v46 }
  0xa0   :  { %477 = vmatpush.msra.mxu3 %v438_v31  ;;  %457 = vmatpush.msra.mxu2 %v422_v48 }
  0xa2   :  { %478 = vmatpush.msra.mxu3 %v437_v33  ;;  %458 = vmatpush.msra.mxu2 %v421_v50 }
  0xa4   :  { %479 = vmatpush.msra.mxu3 %v436_v47  ;;  %459 = vmatpush.msra.mxu2 %v420_v52 }
  0xa6   :  { %480 = vmatpush.msra.mxu3 %v435_v49  ;;  %460 = vmatpush.msra.mxu2 %v419_v54 }
  0xa8   :  { %481 = vmatpush.msra.mxu3 %v434_v51  ;;  %461 = vmatpush.msra.mxu2 %v418_v56 }
  0xaa   :  { %482 = vmatpush.msra.mxu3 %v433_v53  ;;  %462 = vmatpush.msra.mxu2 %v417_v58 }
  0xac   :  { %483 = vmatpush.msra.mxu3 %v432_v55  ;;  %463 = vmatpush.msra.mxu2 %v416_v60 }
  0xae   :  { %484 = vmatpush.msra.mxu3 %v431_v57  ;;  %464 = vmatpush.msra.mxu2 %v415_v61 }
  0xb0   :  { %485 = vmatpush.msra.mxu3 %v430_v59  ;;  %465 = vmatpush.msra.mxu2 %v414_v62 }
 0x10d   :  { %v237_v35 = vpop.f32.mrf.mxu0 }
 0x10e   :  { %v238_v36 = vadd.f32 %v237_v35, %v177_v34  ;;  %v257_v37 = vpop.f32.mrf.mxu1 }
 0x110   :  { %v258_v38 = vadd.f32 %v257_v37, %v238_v36 }
 0x112   :  { %v261_v40 = vmax.f32 %v258_v38, 0.0 }
 0x113   :  { %v197_v41 = vpop.f32.mrf.mxu2 }
 0x114   :  { %v198_v42 = vadd.f32 %v197_v41, %v176_v39  ;;  %368 = vmatmul.f32.vlgmr.msrb.gmra.mxu3 %v261_v40  ;;  %408 = vmatmul.f32.vlgmr.msra.gmra.mxu1 %v261_v40  ;;  %v217_v43 = vpop.f32.mrf.mxu3 }
 0x116   :  { %v218_v44 = vadd.f32 %v217_v43, %v198_v42 }
 0x118   :  { %v260_v45 = vmax.f32 %v218_v44, 0.0 }
 0x11a   :  { %348 = vmatmul.f32.vlgmr.msrb.gmra.mxu2 %v260_v45  ;;  %388 = vmatmul.f32.vlgmr.msra.gmra.mxu0 %v260_v45 }
 0x191   :  { %v409_v3 = vpop.f32.mrf.mxu1 }
 0x197   :  { %v389_v1 = vpop.f32.mrf.mxu0  ;;  %v369_v9 = vpop.f32.mrf.mxu3 }
 0x198   :  { %v390_v2 = vadd.f32 %v389_v1, %v329_v0 }
 0x19a   :  { %v410_v4 = vadd.f32 %v409_v3, %v390_v2 }
 0x19c   :  { %v413_v6 = vmax.f32 %v410_v4, 0.0 }
 0x19d   :  { %v349_v7 = vpop.f32.mrf.mxu2 }
 0x19e   :  { %v350_v8 = vadd.f32 %v349_v7, %v328_v5  ;;  %486 = vmatmul.f32.vlgmr.msra.gmra.mxu3 %v413_v6 }
 0x1a0   :  { %v370_v10 = vadd.f32 %v369_v9, %v350_v8 }
 0x1a2   :  { %v412_v11 = vmax.f32 %v370_v10, 0.0 }
 0x1a4   :  { %466 = vmatmul.f32.vlgmr.msra.gmra.mxu2 %v412_v11 }
 0x221   :  { %v487_v15 = vpop.f32.mrf.mxu3 }
 0x227   :  { %v467_v13 = vpop.f32.mrf.mxu2 }
 0x228   :  { %v468_v14 = vadd.f32 %v514_v12, %v467_v13 }
 0x22a   :  { %v488_v16 = vadd.f32 %v487_v15, %v468_v14 }
 0x22c   :  { %490 = vst [vmem:[#allocation5] sm:$0xff] %v488_v16 }
 0x22d   :  { %501 = dma.vmem_to_hbm [thread:$0]  %s497_s11, 128, %s499_s14, [#allocation4]  }
 0x22e   :  { %565 = dma.done.wait [#allocation4], 128  }
 0x22f   :  { %566 = vsyncadd [#allocation4], 4294967168 }
 0x230   :  { %506 = vsyncpa [#allocation3], 1 }
 0x231   :  { %507 = vsyncpa [#allocation4], 1 }

</bundles_post_ra>
